<compile_context>
chip_gen: v7x
topology: tpu7x:2x2x1
jax: 0.10.0
libtpu: 0.0.40
codegen_flags: <defaults>
</compile_context>

<pallas_src>
import functools

import jax
import jax.numpy as jnp
from jax.experimental import pallas as pl
from jax.experimental.pallas import tpu as pltpu

LANE = 128
SUBLANE = 8


def _round_up(x, m):
    return ((x + m - 1) // m) * m


def _vmem_capacity_bytes():
    """Physical VMEM of the current generation; conservative 64 MiB (v7x) fallback."""
    try:
        return int(pltpu.get_tpu_info().vmem_capacity_bytes)
    except Exception:
        return 64 << 20


# ---------------------------------------------------------------------------
# Kernels
# ---------------------------------------------------------------------------
def linear_kernel_dense(x_ref, wt_ref, b_ref, o_ref):
    # x_ref:(TM,D_in)  wt_ref:(D_in,COLS)  b_ref:(1,COLS)  o_ref:(TM,COLS)
    acc = jnp.dot(x_ref[...], wt_ref[...], preferred_element_type=jnp.float32)
    o_ref[...] = (acc + b_ref[...]).astype(o_ref.dtype)


def linear_kernel_narrow(x_ref, wt_ref, b_ref, o_ref, *, d_out):
    # Same as above, but only the d_out valid columns are written back to HBM
    # (output array is (B, d_out), not lane-padded) -> byte-minimal writeback.
    acc = jnp.dot(x_ref[...], wt_ref[...], preferred_element_type=jnp.float32)
    acc = acc + b_ref[...]
    o_ref[...] = acc[:, :d_out].astype(o_ref.dtype)


# ---------------------------------------------------------------------------
# One-time parameter prep (init time, NOT per forward call)
# ---------------------------------------------------------------------------
def prepare_params(weight, bias, param_dtype=None):
    """weight: (D_out, D_in) nn.Linear layout; bias: (D_out,).
    Returns (wt (D_in, D_out_p), bias (1, D_out_p)) with D_out padded to a multiple of
    128 so the MXU runs full-width. param_dtype=jnp.bfloat16 halves resident bytes; the
    matmul still accumulates in f32."""
    d_out, d_in = weight.shape
    d_out_p = _round_up(d_out, LANE)
    dt = param_dtype or weight.dtype
    wt = jnp.zeros((d_in, d_out_p), dt).at[:, :d_out].set(weight.T.astype(dt))
    b2 = jnp.zeros((1, d_out_p), dt).at[0, :d_out].set(bias.astype(dt))
    return wt, b2


# ---------------------------------------------------------------------------
# Tiling helpers
# ---------------------------------------------------------------------------
def _choose_tm(batch, per_row_bytes, resident_bytes, budget_bytes, cap_rows=8192):
    """Largest batch tile (multiple of 8, <= cap_rows) fitting the VMEM budget."""
    tm = min(cap_rows, _round_up(batch, SUBLANE))
    while tm > SUBLANE and resident_bytes + tm * per_row_bytes > budget_bytes:
        tm //= 2
    tm = max(SUBLANE, _round_up(tm, SUBLANE))
    # For large batches make sure there are >= 2 tiles so the "parallel" batch axis can
    # actually feed both TensorCores on v7x (megacore); never grows tm.
    if batch >= 1024:
        tm = min(tm, _round_up(pl.cdiv(batch, 2), SUBLANE))
    return tm


# ---------------------------------------------------------------------------
# Forward
# ---------------------------------------------------------------------------
def logistic_regression_forward(x, wt_padded, bias_padded, output_dim):
    """x: (B, D_in); wt_padded: (D_in, D_out_p); bias_padded: (1, D_out_p).
    Returns (B, output_dim) = x @ W^T + b (same math as the PyTorch module)."""
    B, d_in = x.shape
    d_in_w, d_out_p = wt_padded.shape
    assert d_in == d_in_w, "weight / input feature mismatch"

    x_item = jnp.dtype(x.dtype).itemsize
    w_item = jnp.dtype(wt_padded.dtype).itemsize
    out_dtype = x.dtype
    out_item = jnp.dtype(out_dtype).itemsize

    cap = _vmem_capacity_bytes()
    budget = int(cap * 0.70)      # ~90 MiB on v5e/v6e (128 MiB), ~45 MiB on v7x (64 MiB)
    headroom = 4 << 20

    # Resident weight + bias, counted at 2x (default BlockSpec double-buffering).
    resident = 2 * (d_in * d_out_p + d_out_p) * w_item

    if resident <= budget:
        # --------- primary path: resident weight, batch streamed over a 1-D grid -------
        narrow_out = d_out_p >= 2 * output_dim   # significant lane padding -> don't write it
        d_store = output_dim if narrow_out else d_out_p
        per_row = 2 * (d_in * x_item + d_store * out_item)   # double-buffered x + out tiles

        tm = _choose_tm(B, per_row, resident, budget)
        vmem_needed = resident + tm * per_row
        vmem_limit = int(min(max(vmem_needed + headroom, 8 << 20), cap))

        kernel = (functools.partial(linear_kernel_narrow, d_out=output_dim)
                  if narrow_out else linear_kernel_dense)

        out = pl.pallas_call(
            kernel,
            out_shape=jax.ShapeDtypeStruct((B, d_store), out_dtype),
            grid_spec=pltpu.PrefetchScalarGridSpec(
                num_scalar_prefetch=0,
                grid=(pl.cdiv(B, tm),),
                in_specs=[
                    pl.BlockSpec((tm, d_in), lambda i: (i, 0)),        # streamed batch tile
                    pl.BlockSpec((d_in, d_out_p), lambda i: (0, 0)),   # resident weight
                    pl.BlockSpec((1, d_out_p), lambda i: (0, 0)),      # resident bias
                ],
                out_specs=pl.BlockSpec((tm, d_store), lambda i: (i, 0)),
            ),
            compiler_params=pltpu.CompilerParams(
                dimension_semantics=("parallel",),
                vmem_limit_bytes=vmem_limit,
            ),
            cost_estimate=pl.CostEstimate(
                flops=2 * B * d_in * d_out_p,
                transcendentals=0,
                bytes_accessed=(B * d_in * x_item
                                + (d_in * d_out_p + d_out_p) * w_item
                                + B * d_store * out_item),
            ),
        )(x, wt_padded, bias_padded)
        # Narrow path already has the exact shape; dense path is either exact
        # (d_out multiple of 128) or needs a small trim.
        return out if narrow_out else out[:, :output_dim]

    # --------- fallback path: weight too large to keep resident -> tile class dim ------
    tn = d_out_p
    while tn > LANE and 2 * (d_in * tn + tn) * w_item > budget // 2:
        tn //= 2
    tn = max(LANE, _round_up(tn, LANE))
    # TODO(synk): if d_in is so large that even a (8, d_in) x-tile overflows VMEM, add a
    # K-tiled reduction axis ("arbitrary") with an f32 accumulator scratch.
    resident_nt = 2 * (d_in * tn + tn) * w_item
    per_row = 2 * (d_in * x_item + tn * out_item)
    tm = _choose_tm(B, per_row, resident_nt, budget)
    vmem_needed = resident_nt + tm * per_row
    vmem_limit = int(min(max(vmem_needed + headroom, 8 << 20), cap))

    out_padded = pl.pallas_call(
        linear_kernel_dense,
        out_shape=jax.ShapeDtypeStruct((B, d_out_p), out_dtype),
        grid_spec=pltpu.PrefetchScalarGridSpec(
            num_scalar_prefetch=0,
            grid=(pl.cdiv(B, tm), d_out_p // tn),
            in_specs=[
                pl.BlockSpec((tm, d_in), lambda i, j: (i, 0)),
                pl.BlockSpec((d_in, tn), lambda i, j: (0, j)),
                pl.BlockSpec((1, tn), lambda i, j: (0, j)),
            ],
            out_specs=pl.BlockSpec((tm, tn), lambda i, j: (i, j)),
        ),
        compiler_params=pltpu.CompilerParams(
            dimension_semantics=("parallel", "parallel"),
            vmem_limit_bytes=vmem_limit,
        ),
        cost_estimate=pl.CostEstimate(
            flops=2 * B * d_in * d_out_p,
            transcendentals=0,
            bytes_accessed=(B * d_in * x_item
                            + (d_in * d_out_p + d_out_p) * w_item * pl.cdiv(B, tm)
                            + B * d_out_p * out_item),
        ),
    )(x, wt_padded, bias_padded)
    return out_padded[:, :output_dim]


if __name__ == "__main__":
    # Small synthetic shapes consistent with the module:
    # LogisticRegression(input_dim, output_dim) on a (batch, input_dim) feature table.
    batch, input_dim, output_dim = 8, 32, 4

    key = jax.random.PRNGKey(0)
    kx, kw, kb = jax.random.split(key, 3)

    x = jax.random.normal(kx, (batch, input_dim), dtype=jnp.float32)
    # Mimic nn.Linear's uniform(-1/sqrt(fan_in), 1/sqrt(fan_in)) init.
    bound = 1.0 / float(input_dim) ** 0.5
    weight = jax.random.uniform(kw, (output_dim, input_dim), jnp.float32, -bound, bound)
    bias = jax.random.uniform(kb, (output_dim,), jnp.float32, -bound, bound)

    # Init-time prep (done once, like storing the parameter in kernel-friendly layout).
    wt_p, b_p = prepare_params(weight, bias)

    out = logistic_regression_forward(x, wt_p, b_p, output_dim)
    out = jax.block_until_ready(out)

    # Reference: same math as the torch forward (no sigmoid in the module's forward).
    ref = x @ weight.T + bias
    assert out.shape == (batch, output_dim)
    assert jnp.allclose(out, ref, atol=1e-5, rtol=1e-5)

    print("KERNEL_OK")
</pallas_src>

<mosaic_0001>
module attributes {stable_mosaic.version = 11 : i64} {
  func.func @linear_kernel_narrow(%arg0: i32, %arg1: memref<8x32xf32, #tpu.memory_space<vmem>>, %arg2: memref<32x128xf32, #tpu.memory_space<vmem>>, %arg3: memref<1x128xf32, #tpu.memory_space<vmem>>, %arg4: memref<8x4xf32, #tpu.memory_space<vmem>>) attributes {dimension_semantics = [#tpu.dimension_semantics<parallel>], iteration_bounds = array<i64: 1>, scalar_prefetch = 0 : i64, scratch_operands = 0 : i64, tpu.core_type = #tpu.core_type<tc>, window_params = [{transform_indices = @transform_0, window_bounds = array<i64: 8, 32>}, {pipeline_mode = #tpu.pipeline_mode<synchronous>, transform_indices = @transform_1, window_bounds = array<i64: 32, 128>}, {pipeline_mode = #tpu.pipeline_mode<synchronous>, transform_indices = @transform_2, window_bounds = array<i64: 1, 128>}, {transform_indices = @transform_3, window_bounds = array<i64: 8, 4>}]} {
    %c0 = arith.constant 0 : index
    %c0_0 = arith.constant 0 : index
    %0 = vector.load %arg1[%c0, %c0_0] : memref<8x32xf32, #tpu.memory_space<vmem>>, vector<8x32xf32>
    %c0_1 = arith.constant 0 : index
    %c0_2 = arith.constant 0 : index
    %1 = vector.load %arg2[%c0_1, %c0_2] : memref<32x128xf32, #tpu.memory_space<vmem>>, vector<32x128xf32>
    %cst = arith.constant dense<0.000000e+00> : vector<8x128xf32>
    %2 = tpu.matmul %0, %1, %cst {dimension_numbers = #tpu.dot_dimension_numbers<[1], [0], [0], [1], [0, 0, 1, 1], [], []>} : vector<8x32xf32>, vector<32x128xf32>, vector<8x128xf32> -> vector<8x128xf32>
    %c0_3 = arith.constant 0 : index
    %c0_4 = arith.constant 0 : index
    %3 = vector.load %arg3[%c0_3, %c0_4] : memref<1x128xf32, #tpu.memory_space<vmem>>, vector<1x128xf32>
    %4 = vector.broadcast %3 : vector<1x128xf32> to vector<8x128xf32>
    %5 = arith.addf %2, %4 : vector<8x128xf32>
    %6 = vector.extract_strided_slice %5 {offsets = [0, 0], sizes = [8, 4], strides = [1, 1]} : vector<8x128xf32> to vector<8x4xf32>
    %c0_5 = arith.constant 0 : index
    %c0_6 = arith.constant 0 : index
    %7 = vector.load %arg4[%c0_5, %c0_6] : memref<8x4xf32, #tpu.memory_space<vmem>>, vector<8x4xf32>
    tpu.vector_store %arg4[%c0_5, %c0_6], %6 {strides = array<i32>} : memref<8x4xf32, #tpu.memory_space<vmem>>, vector<8x4xf32>,
    return
  }
  func.func @transform_0(%arg0: i32) -> (i32, i32) {
    %c0_i32 = arith.constant 0 : i32
    %c0_i32_0 = arith.constant 0 : i32
    return %arg0, %c0_i32 : i32, i32
  }
  func.func @transform_1(%arg0: i32) -> (i32, i32) {
    %c0_i32 = arith.constant 0 : i32
    %c0_i32_0 = arith.constant 0 : i32
    %c0_i32_1 = arith.constant 0 : i32
    return %c0_i32, %c0_i32_0 : i32, i32
  }
  func.func @transform_2(%arg0: i32) -> (i32, i32) {
    %c0_i32 = arith.constant 0 : i32
    %c0_i32_0 = arith.constant 0 : i32
    %c0_i32_1 = arith.constant 0 : i32
    return %c0_i32, %c0_i32_0 : i32, i32
  }
  func.func @transform_3(%arg0: i32) -> (i32, i32) {
    %c0_i32 = arith.constant 0 : i32
    %c0_i32_0 = arith.constant 0 : i32
    return %arg0, %c0_i32 : i32, i32
  }
}

</mosaic_0001>

<bundles_post_ra>
// kernel: tpu_custom_call.1
= control target key start
LH: loop header
LB: loop body
LE: loop exit
PB: predicated region body
PF: predicated region fallthrough
CT: control target
= control target key end

     0   :  { %8 = vsyncpa [#allocation3], 0  ;;  %s277_s0 = inlined_call_operand.hbm [shape: f32[8,32], index: 0, kind: input, shape index: {}]   ;;  %s278_s1 = inlined_call_operand.hbm [shape: f32[32,128], index: 1, kind: input, shape index: {}]   ;;  %s279_s2 = inlined_call_operand.vmem [shape: f32[1,128], index: 2, kind: input, shape index: {}]   ;;  %s280_s3 = inlined_call_operand.vmem [shape: f32[8,4], index: 3, kind: output, shape index: {}]  }
   0x1   :  { %9 = vsyncpa [#allocation5], 0  ;;  %s213_s12 = smov [#allocation2]   ;;  %s214_s14 = smov [#allocation4]  }
   0x2   :  { %s16_s13 = sshll.u32 %s213_s12, 4  ;;  %s25_s15 = sshll.u32 %s214_s14, 4  ;;  %s17_s13 = int_to_ptr.vmem [resolvable:$true] %s16_s13  ;;  %s240_s15 = int_to_ptr.vmem [resolvable:$true] %s25_s15 }
   0x3   :  { %s165_s18 = scalar_lea.hbm %s277_s0, 128 }
   0x4   :  { %p166_p0 = scmp.ne.s32.totalorder %s277_s0, %s165_s18  ;;  %p169_p1 = scmp.lt.u32.totalorder %s165_s18, %s277_s0 }
   0x6   :  { %p171_p2 = pnand %p169_p1, %p166_p0 }
   0x8   :  { %174 = shalt.err (!%p171_p2)
}
   0x9   :  { %s175_s23 = scalar_lea.vmem %s17_s13, 128  ;;  %p180_p4 = scmp.lt.s32.totalorder %s17_s13, %s17_s13 }
   0xa   :  { %p176_p3 = scmp.ne.s32.totalorder %s17_s13, %s175_s23  ;;  %p181_p5 = scmp.lt.s32.totalorder %s175_s23, %s175_s23 }
   0xc   :  { %p182_p6 = por %p181_p5, %p180_p4 }
   0xe   :  { %p183_p7 = pnand %p182_p6, %p176_p3 }
  0x10   :  { %186 = shalt.err (!%p183_p7)
}
  0x11   :  { %19 = dma.hbm_to_vmem [thread:$0]  %s277_s0, 128, %s17_s13, [#allocation3]  }
  0x12   :  { %s187_s28 = scalar_lea.hbm %s278_s1, 512 }
  0x13   :  { %p188_p8 = scmp.ne.s32.totalorder %s278_s1, %s187_s28  ;;  %p191_p9 = scmp.lt.u32.totalorder %s187_s28, %s278_s1 }
  0x15   :  { %p193_p10 = pnand %p191_p9, %p188_p8 }
  0x17   :  { %196 = shalt.err (!%p193_p10)
}
  0x18   :  { %s197_s6 = scalar_lea.vmem %s240_s15, 512  ;;  %p202_p12 = scmp.lt.s32.totalorder %s240_s15, %s240_s15 }
  0x19   :  { %p198_p11 = scmp.ne.s32.totalorder %s240_s15, %s197_s6  ;;  %p203_p13 = scmp.lt.s32.totalorder %s197_s6, %s197_s6 }
  0x1b   :  { %p204_p0 = por %p203_p13, %p202_p12 }
  0x1d   :  { %p205_p1 = pnand %p204_p0, %p198_p11 }
  0x1f   :  { %208 = shalt.err (!%p205_p1)
}
  0x20   :  { %s215_s0 = smov 128   ;;  %s216_s7 = smov 8  }
  0x21   :  { %31 = dma.hbm_to_vmem [thread:$0]  %s278_s1, 512, %s240_s15, [#allocation5], %s215_s0, %s215_s0, %s216_s7  }
  0x22   :  { %209 = dma.done.wait [#allocation3], 128  }
  0x23   :  { %210 = vsyncadd [#allocation3], 4294967168 }
  0x24   :  { %211 = dma.done.wait [#allocation5], 512  }
  0x25   :  { %212 = vsyncadd [#allocation5], 4294966784  ;;  %v217_v0 = vmov 0.0|0.0   ;;  %vm218_vm0 = vmmov 0   ;;  %v219_v1 = vmov 0.0   ;;  %v41_v2 = vld [vmem:[#allocation4] sm:$0xff] }
  0x26   :  { %152 = vmatprep.subr.bf16.mxu0 %v217_v0  ;;  %149 = vmatprep.mubr.msk.f32.mxu0 %vm218_vm0, %v219_v1  ;;  %v42_v3 = vld [vmem:[#allocation4 + $0x8] sm:$0xff]  ;;  %v43_v4 = vld [vmem:[#allocation4 + $0x10] sm:$0xff]  ;;  %v44_v6 = vld [vmem:[#allocation4 + $0x18] sm:$0xff]  ;;  %vm52_vm1 = vcmask 261120   ;;  %vm126_vm2 = vcmask 31744  }
  0x27   :  { %v153_v5 = vpack.c.bf16 %v42_v3, %v41_v2  ;;  %v156_v7 = vpack.c.bf16 %v44_v6, %v43_v4  ;;  %v40_v8 = vld [vmem:[#allocation2] sm:$0xff]  ;;  %v134_v9 = vld [vmem:[%s279_s2] ss:$0 sm:$0xff] }
  0x29   :  { %154 = vmatpush3.bf16.msra.mxu0 %v153_v5 }
  0x2a   :  { %155 = vmatprep.subr.bf16.mxu0 %v217_v0 }
  0x2d   :  { %157 = vmatpush3.bf16.msra.mxu0 %v156_v7 }
  0x30   :  { %150 = vmatmul.mubr.msk.f32.vlgmr.msra.gmra.mrb[0].mxu0 %vm52_vm1, %v40_v8 }
 0x103   :  { %v122_v10 = vpop.f32.mrb[0].mxu0 }
 0x104   :  { %v123_v11 = vadd.f32 %v134_v9, %v122_v10  ;;  %v151_v12 = vpop.f32.mrb[1].mxu0 }
 0x106   :  { %127 = vst.msk [vmem:[%s280_s3] sm:$0xff] %vm126_vm2, %v123_v11 }
 0x107   :  { %132 = vsyncpa [#allocation3], 1 }
 0x108   :  { %133 = vsyncpa [#allocation5], 1 }

</bundles_post_ra>
